<compile_context>
chip_gen: v5e
topology: v5e:2x2
jax: 0.10.0
libtpu: 0.0.40
codegen_flags: <defaults>
</compile_context>

<pallas_src>
import jax
import jax.numpy as jnp
from jax.experimental import pallas as pl
from jax.experimental.pallas import tpu as pltpu

EPS = 1e-5


# ----------------------------------------------------------------------------
# One-time parameter preparation (hoisted out of the jitted forward)
# ----------------------------------------------------------------------------
def _banded_conv_weight(w, W):
    """PyTorch OIHW (Cout, Cin, 3, 3) -> banded (3, W*Cin, W*Cout).

    With a height-padded, lane-dense activation buffer buf[h', w_in*Cin + ci]
    (rows 0 and H+1 zero), the 3x3 / pad=1 conv of one image is
        y[h, w_out*Cout + co] = sum_kh  buf[h + kh, :] @ B[kh]
    where B[kh, w_in*Cin + ci, w_out*Cout + co] = w[co, ci, kh, w_in - w_out + 1]
    for taps inside the kernel window and 0 otherwise.  The W-axis zero
    padding is folded into this band structure, so no padded columns are
    needed in VMEM.
    """
    cout, cin = w.shape[0], w.shape[1]
    wt = jnp.transpose(w, (2, 3, 1, 0)).astype(jnp.float32)    # [kh, kw, ci, co]
    w_in = jnp.arange(W)[:, None]                              # (W, 1)
    w_out = jnp.arange(W)[None, :]                             # (1, W)
    kw = w_in - w_out + 1                                      # tap index
    valid = ((kw >= 0) & (kw <= 2)).astype(jnp.float32)        # (W, W)
    kw_c = jnp.clip(kw, 0, 2)
    blocks = wt[:, kw_c] * valid[None, :, :, None, None]       # (3, W, W, Cin, Cout)
    return jnp.transpose(blocks, (0, 1, 3, 2, 4)).reshape(3, W * cin, W * cout)


def prepare_params(w1, g1, b1, w2, g2, b2, W):
    """One-time conversion of PyTorch-layout parameters to kernel layout."""
    cout = w1.shape[0]
    wb1 = _banded_conv_weight(w1, W)                           # (3, W*Cin,  W*Cout)
    wb2 = _banded_conv_weight(w2, W)                           # (3, W*Cout, W*Cout)
    # Channel-group sum matrix: (1, W*Cout) @ P collapses per-lane sums to
    # per-channel sums, already broadcast back across the W lane groups.
    p = jnp.tile(jnp.eye(cout, dtype=jnp.float32), (W, W))     # (W*Cout, W*Cout)
    g1t = jnp.tile(g1.astype(jnp.float32), W).reshape(1, W * cout)
    b1t = jnp.tile(b1.astype(jnp.float32), W).reshape(1, W * cout)
    g2t = jnp.tile(g2.astype(jnp.float32), W).reshape(1, W * cout)
    b2t = jnp.tile(b2.astype(jnp.float32), W).reshape(1, W * cout)
    return wb1, wb2, g1t, b1t, g2t, b2t, p


# ----------------------------------------------------------------------------
# Fused kernel
# ----------------------------------------------------------------------------
def _make_fused_kernel(N, H, W, Cin, Cout):
    inv_m = 1.0 / float(N * H * W)   # BN uses biased variance (divide by M)

    def kernel(x_ref, wb1_ref, wb2_ref, g1_ref, b1_ref, g2_ref, b2_ref,
               p_ref, o_ref, xpad_ref, y1_ref, y1pad_ref):
        f32 = jnp.float32

        def band_conv(buf_ref, wb_ref):
            """3x3 conv of one image: 3 MXU dots over height-shifted bands."""
            acc = jnp.dot(buf_ref[0:H, :], wb_ref[0], preferred_element_type=f32)
            acc += jnp.dot(buf_ref[1:H + 1, :], wb_ref[1], preferred_element_type=f32)
            acc += jnp.dot(buf_ref[2:H + 2, :], wb_ref[2], preferred_element_type=f32)
            return acc                                         # (H, W*Cout)

        def bn_scale_shift(raw, g_t, b_t):
            """Training-mode BN batch stats -> fused (scale, shift), lane-tiled."""
            s = jnp.sum(raw, axis=0, keepdims=True)            # (1, W*Cout)
            ss = jnp.sum(raw * raw, axis=0, keepdims=True)     # (1, W*Cout)
            mean_t = jnp.dot(s, p_ref[...], preferred_element_type=f32) * inv_m
            ex2_t = jnp.dot(ss, p_ref[...], preferred_element_type=f32) * inv_m
            # One-pass variance; clamp to avoid tiny negative values -> NaN.
            var_t = jnp.maximum(ex2_t - mean_t * mean_t, 0.0)
            scale_t = g_t * jax.lax.rsqrt(var_t + EPS)
            shift_t = b_t - mean_t * scale_t
            return scale_t, shift_t

        # ---- conv1 (banded matmul per image) -> y1 scratch ------------------
        # Zero the padded scratch ONCE (only the two halo rows matter; the
        # interior rows are fully overwritten for every image).
        xpad_ref[...] = jnp.zeros_like(xpad_ref)
        for n in range(N):                                     # N=2: static unroll
            xpad_ref[1:H + 1, :] = x_ref[n * H:(n + 1) * H, :]
            y1_ref[n * H:(n + 1) * H, :] = band_conv(xpad_ref, wb1_ref)

        # ---- BN1 batch stats over all images (VMEM-resident) ----------------
        scale1_t, shift1_t = bn_scale_shift(y1_ref[...], g1_ref[...], b1_ref[...])

        # ---- BN1 affine + ReLU -> conv2; raw conv2 goes straight to o_ref ---
        y1pad_ref[...] = jnp.zeros_like(y1pad_ref)
        for n in range(N):
            y1pad_ref[1:H + 1, :] = jnp.maximum(
                y1_ref[n * H:(n + 1) * H, :] * scale1_t + shift1_t, 0.0)
            o_ref[n * H:(n + 1) * H, :] = band_conv(y1pad_ref, wb2_ref)

        # ---- BN2 batch stats + affine + ReLU (full-width lane-dense store) --
        scale2_t, shift2_t = bn_scale_shift(o_ref[...], g2_ref[...], b2_ref[...])
        o_ref[...] = jnp.maximum(o_ref[...] * scale2_t + shift2_t, 0.0)

    return kernel


# ----------------------------------------------------------------------------
# Wrapper
# ----------------------------------------------------------------------------
@jax.jit
def conv_block_forward(x_nchw, wb1, wb2, g1t, b1t, g2t, b2t, p):
    """ConvBlock forward. Input/output are NCHW (PyTorch convention)."""
    N, Cin, H, W = x_nchw.shape
    Cout = g1t.shape[-1] // W

    # NCHW -> lane-dense (N*H, W*Cin), channel-minor within each row.
    # TODO(synk): an NHWC-native caller would drop this transpose and the one
    # at the exit; they are kept only because the module interface is NCHW.
    x_ld = jnp.transpose(x_nchw, (0, 2, 3, 1)).reshape(N * H, W * Cin)
    x_ld = x_ld.astype(jnp.float32)

    vmem = pl.BlockSpec(memory_space=pltpu.MemorySpace.VMEM)

    out_ld = pl.pallas_call(
        _make_fused_kernel(N, H, W, Cin, Cout),
        out_shape=jax.ShapeDtypeStruct((N * H, W * Cout), jnp.float32),
        in_specs=[vmem] * 8,
        out_specs=vmem,
        scratch_shapes=[
            pltpu.VMEM((H + 2, W * Cin), jnp.float32),    # height-padded input
            pltpu.VMEM((N * H, W * Cout), jnp.float32),   # conv1 raw (all images)
            pltpu.VMEM((H + 2, W * Cout), jnp.float32),   # height-padded BN1/ReLU act
        ],
    )(x_ld, wb1, wb2, g1t, b1t, g2t, b2t, p)

    return jnp.transpose(out_ld.reshape(N, H, W, Cout), (0, 3, 1, 2))   # NCHW


# ----------------------------------------------------------------------------
# Pure-JAX reference (NCHW, matches PyTorch training-mode BN forward)
# ----------------------------------------------------------------------------
def reference_forward(x_nchw, w1, g1, b1, w2, g2, b2):
    def conv_bn_relu(x, w, g, b):
        y = jax.lax.conv_general_dilated(
            x, w, window_strides=(1, 1), padding=((1, 1), (1, 1)),
            dimension_numbers=('NCHW', 'OIHW', 'NCHW'))
        mean = jnp.mean(y, axis=(0, 2, 3), keepdims=True)
        var = jnp.mean((y - mean) ** 2, axis=(0, 2, 3), keepdims=True)
        yn = (y - mean) * jax.lax.rsqrt(var + EPS)
        yn = yn * g.reshape(1, -1, 1, 1) + b.reshape(1, -1, 1, 1)
        return jnp.maximum(yn, 0.0)

    return conv_bn_relu(conv_bn_relu(x_nchw, w1, g1, b1), w2, g2, b2)


if __name__ == "__main__":
    # Small, deterministic synthetic setup (matches the module's signature).
    N, Cin, Cout, H, W = 2, 4, 8, 16, 16

    key = jax.random.PRNGKey(0)
    kx, kw1, kw2, kg1, kb1, kg2, kb2 = jax.random.split(key, 7)

    x = jax.random.normal(kx, (N, Cin, H, W), dtype=jnp.float32)
    w1 = jax.random.normal(kw1, (Cout, Cin, 3, 3), dtype=jnp.float32) * 0.1
    w2 = jax.random.normal(kw2, (Cout, Cout, 3, 3), dtype=jnp.float32) * 0.1
    g1 = 1.0 + 0.1 * jax.random.normal(kg1, (Cout,), dtype=jnp.float32)
    b1 = 0.1 * jax.random.normal(kb1, (Cout,), dtype=jnp.float32)
    g2 = 1.0 + 0.1 * jax.random.normal(kg2, (Cout,), dtype=jnp.float32)
    b2 = 0.1 * jax.random.normal(kb2, (Cout,), dtype=jnp.float32)

    # One-time parameter layout conversion (outside the jitted forward).
    params = prepare_params(w1, g1, b1, w2, g2, b2, W)

    out = jax.block_until_ready(conv_block_forward(x, *params))
    ref = jax.block_until_ready(reference_forward(x, w1, g1, b1, w2, g2, b2))

    assert out.shape == (N, Cout, H, W), out.shape
    max_err = float(jnp.max(jnp.abs(out - ref)))
    assert jnp.allclose(out, ref, atol=1e-3, rtol=1e-3), max_err

    print("KERNEL_OK")
</pallas_src>

<mosaic_0001>
module attributes {stable_mosaic.version = 11 : i64} {
  func.func @kernel(%arg0: memref<32x64xf32, #tpu.memory_space<vmem>>, %arg1: memref<3x64x128xf32, #tpu.memory_space<vmem>>, %arg2: memref<3x128x128xf32, #tpu.memory_space<vmem>>, %arg3: memref<1x128xf32, #tpu.memory_space<vmem>>, %arg4: memref<1x128xf32, #tpu.memory_space<vmem>>, %arg5: memref<1x128xf32, #tpu.memory_space<vmem>>, %arg6: memref<1x128xf32, #tpu.memory_space<vmem>>, %arg7: memref<128x128xf32, #tpu.memory_space<vmem>>, %arg8: memref<32x128xf32, #tpu.memory_space<vmem>>, %arg9: memref<18x64xf32, #tpu.memory_space<vmem>>, %arg10: memref<32x128xf32, #tpu.memory_space<vmem>>, %arg11: memref<18x128xf32, #tpu.memory_space<vmem>>) attributes {dimension_semantics = [], scalar_prefetch = 0 : i64, scratch_operands = 3 : i64, tpu.core_type = #tpu.core_type<tc>} {
    %cst = arith.constant 0.000000e+00 : f32
    %0 = vector.broadcast %cst : f32 to vector<18x64xf32>
    %c0 = arith.constant 0 : index
    %c0_0 = arith.constant 0 : index
    %1 = vector.load %arg9[%c0, %c0_0] : memref<18x64xf32, #tpu.memory_space<vmem>>, vector<18x64xf32>
    tpu.vector_store %arg9[%c0, %c0_0], %0 {strides = array<i32>} : memref<18x64xf32, #tpu.memory_space<vmem>>, vector<18x64xf32>,
    %c0_1 = arith.constant 0 : index
    %c0_2 = arith.constant 0 : index
    %2 = vector.load %arg0[%c0_1, %c0_2] : memref<32x64xf32, #tpu.memory_space<vmem>>, vector<16x64xf32>
    %c1 = arith.constant 1 : index
    %c0_3 = arith.constant 0 : index
    %3 = vector.load %arg9[%c1, %c0_3] : memref<18x64xf32, #tpu.memory_space<vmem>>, vector<16x64xf32>
    tpu.vector_store %arg9[%c1, %c0_3], %2 {strides = array<i32>} : memref<18x64xf32, #tpu.memory_space<vmem>>, vector<16x64xf32>,
    %c0_4 = arith.constant 0 : index
    %c0_5 = arith.constant 0 : index
    %4 = vector.load %arg9[%c0_4, %c0_5] : memref<18x64xf32, #tpu.memory_space<vmem>>, vector<16x64xf32>
    %c0_6 = arith.constant 0 : index
    %c0_7 = arith.constant 0 : index
    %c0_8 = arith.constant 0 : index
    %5 = vector.load %arg1[%c0_6, %c0_7, %c0_8] : memref<3x64x128xf32, #tpu.memory_space<vmem>>, vector<1x64x128xf32>
    %6 = vector.shape_cast %5 : vector<1x64x128xf32> to vector<64x128xf32>
    %cst_9 = arith.constant dense<0.000000e+00> : vector<16x128xf32>
    %7 = tpu.matmul %4, %6, %cst_9 {dimension_numbers = #tpu.dot_dimension_numbers<[1], [0], [0], [1], [0, 0, 1, 1], [], []>} : vector<16x64xf32>, vector<64x128xf32>, vector<16x128xf32> -> vector<16x128xf32>
    %c1_10 = arith.constant 1 : index
    %c0_11 = arith.constant 0 : index
    %8 = vector.load %arg9[%c1_10, %c0_11] : memref<18x64xf32, #tpu.memory_space<vmem>>, vector<16x64xf32>
    %c1_12 = arith.constant 1 : index
    %c0_13 = arith.constant 0 : index
    %c0_14 = arith.constant 0 : index
    %9 = vector.load %arg1[%c1_12, %c0_13, %c0_14] : memref<3x64x128xf32, #tpu.memory_space<vmem>>, vector<1x64x128xf32>
    %10 = vector.shape_cast %9 : vector<1x64x128xf32> to vector<64x128xf32>
    %cst_15 = arith.constant dense<0.000000e+00> : vector<16x128xf32>
    %11 = tpu.matmul %8, %10, %cst_15 {dimension_numbers = #tpu.dot_dimension_numbers<[1], [0], [0], [1], [0, 0, 1, 1], [], []>} : vector<16x64xf32>, vector<64x128xf32>, vector<16x128xf32> -> vector<16x128xf32>
    %12 = arith.addf %7, %11 : vector<16x128xf32>
    %c2 = arith.constant 2 : index
    %c0_16 = arith.constant 0 : index
    %13 = vector.load %arg9[%c2, %c0_16] : memref<18x64xf32, #tpu.memory_space<vmem>>, vector<16x64xf32>
    %c2_17 = arith.constant 2 : index
    %c0_18 = arith.constant 0 : index
    %c0_19 = arith.constant 0 : index
    %14 = vector.load %arg1[%c2_17, %c0_18, %c0_19] : memref<3x64x128xf32, #tpu.memory_space<vmem>>, vector<1x64x128xf32>
    %15 = vector.shape_cast %14 : vector<1x64x128xf32> to vector<64x128xf32>
    %cst_20 = arith.constant dense<0.000000e+00> : vector<16x128xf32>
    %16 = tpu.matmul %13, %15, %cst_20 {dimension_numbers = #tpu.dot_dimension_numbers<[1], [0], [0], [1], [0, 0, 1, 1], [], []>} : vector<16x64xf32>, vector<64x128xf32>, vector<16x128xf32> -> vector<16x128xf32>
    %17 = arith.addf %12, %16 : vector<16x128xf32>
    %c0_21 = arith.constant 0 : index
    %c0_22 = arith.constant 0 : index
    %18 = vector.load %arg10[%c0_21, %c0_22] : memref<32x128xf32, #tpu.memory_space<vmem>>, vector<16x128xf32>
    tpu.vector_store %arg10[%c0_21, %c0_22], %17 {strides = array<i32>} : memref<32x128xf32, #tpu.memory_space<vmem>>, vector<16x128xf32>,
    %c16 = arith.constant 16 : index
    %c0_23 = arith.constant 0 : index
    %19 = vector.load %arg0[%c16, %c0_23] : memref<32x64xf32, #tpu.memory_space<vmem>>, vector<16x64xf32>
    %c1_24 = arith.constant 1 : index
    %c0_25 = arith.constant 0 : index
    %20 = vector.load %arg9[%c1_24, %c0_25] : memref<18x64xf32, #tpu.memory_space<vmem>>, vector<16x64xf32>
    tpu.vector_store %arg9[%c1_24, %c0_25], %19 {strides = array<i32>} : memref<18x64xf32, #tpu.memory_space<vmem>>, vector<16x64xf32>,
    %c0_26 = arith.constant 0 : index
    %c0_27 = arith.constant 0 : index
    %21 = vector.load %arg9[%c0_26, %c0_27] : memref<18x64xf32, #tpu.memory_space<vmem>>, vector<16x64xf32>
    %c0_28 = arith.constant 0 : index
    %c0_29 = arith.constant 0 : index
    %c0_30 = arith.constant 0 : index
    %22 = vector.load %arg1[%c0_28, %c0_29, %c0_30] : memref<3x64x128xf32, #tpu.memory_space<vmem>>, vector<1x64x128xf32>
    %23 = vector.shape_cast %22 : vector<1x64x128xf32> to vector<64x128xf32>
    %cst_31 = arith.constant dense<0.000000e+00> : vector<16x128xf32>
    %24 = tpu.matmul %21, %23, %cst_31 {dimension_numbers = #tpu.dot_dimension_numbers<[1], [0], [0], [1], [0, 0, 1, 1], [], []>} : vector<16x64xf32>, vector<64x128xf32>, vector<16x128xf32> -> vector<16x128xf32>
    %c1_32 = arith.constant 1 : index
    %c0_33 = arith.constant 0 : index
    %25 = vector.load %arg9[%c1_32, %c0_33] : memref<18x64xf32, #tpu.memory_space<vmem>>, vector<16x64xf32>
    %c1_34 = arith.constant 1 : index
    %c0_35 = arith.constant 0 : index
    %c0_36 = arith.constant 0 : index
    %26 = vector.load %arg1[%c1_34, %c0_35, %c0_36] : memref<3x64x128xf32, #tpu.memory_space<vmem>>, vector<1x64x128xf32>
    %27 = vector.shape_cast %26 : vector<1x64x128xf32> to vector<64x128xf32>
    %cst_37 = arith.constant dense<0.000000e+00> : vector<16x128xf32>
    %28 = tpu.matmul %25, %27, %cst_37 {dimension_numbers = #tpu.dot_dimension_numbers<[1], [0], [0], [1], [0, 0, 1, 1], [], []>} : vector<16x64xf32>, vector<64x128xf32>, vector<16x128xf32> -> vector<16x128xf32>
    %29 = arith.addf %24, %28 : vector<16x128xf32>
    %c2_38 = arith.constant 2 : index
    %c0_39 = arith.constant 0 : index
    %30 = vector.load %arg9[%c2_38, %c0_39] : memref<18x64xf32, #tpu.memory_space<vmem>>, vector<16x64xf32>
    %c2_40 = arith.constant 2 : index
    %c0_41 = arith.constant 0 : index
    %c0_42 = arith.constant 0 : index
    %31 = vector.load %arg1[%c2_40, %c0_41, %c0_42] : memref<3x64x128xf32, #tpu.memory_space<vmem>>, vector<1x64x128xf32>
    %32 = vector.shape_cast %31 : vector<1x64x128xf32> to vector<64x128xf32>
    %cst_43 = arith.constant dense<0.000000e+00> : vector<16x128xf32>
    %33 = tpu.matmul %30, %32, %cst_43 {dimension_numbers = #tpu.dot_dimension_numbers<[1], [0], [0], [1], [0, 0, 1, 1], [], []>} : vector<16x64xf32>, vector<64x128xf32>, vector<16x128xf32> -> vector<16x128xf32>
    %34 = arith.addf %29, %33 : vector<16x128xf32>
    %c16_44 = arith.constant 16 : index
    %c0_45 = arith.constant 0 : index
    %35 = vector.load %arg10[%c16_44, %c0_45] : memref<32x128xf32, #tpu.memory_space<vmem>>, vector<16x128xf32>
    tpu.vector_store %arg10[%c16_44, %c0_45], %34 {strides = array<i32>} : memref<32x128xf32, #tpu.memory_space<vmem>>, vector<16x128xf32>,
    %c0_46 = arith.constant 0 : index
    %c0_47 = arith.constant 0 : index
    %36 = vector.load %arg10[%c0_46, %c0_47] : memref<32x128xf32, #tpu.memory_space<vmem>>, vector<32x128xf32>
    %c0_48 = arith.constant 0 : index
    %c0_49 = arith.constant 0 : index
    %37 = vector.load %arg3[%c0_48, %c0_49] : memref<1x128xf32, #tpu.memory_space<vmem>>, vector<1x128xf32>
    %c0_50 = arith.constant 0 : index
    %c0_51 = arith.constant 0 : index
    %38 = vector.load %arg4[%c0_50, %c0_51] : memref<1x128xf32, #tpu.memory_space<vmem>>, vector<1x128xf32>
    %cst_52 = arith.constant dense<0.000000e+00> : vector<128xf32>
    %39 = vector.multi_reduction <add>, %36, %cst_52 [0] : vector<32x128xf32> to vector<128xf32>
    %40 = vector.shape_cast %39 : vector<128xf32> to vector<1x128xf32>
    %41 = arith.mulf %36, %36 : vector<32x128xf32>
    %cst_53 = arith.constant dense<0.000000e+00> : vector<128xf32>
    %42 = vector.multi_reduction <add>, %41, %cst_53 [0] : vector<32x128xf32> to vector<128xf32>
    %43 = vector.shape_cast %42 : vector<128xf32> to vector<1x128xf32>
    %c0_54 = arith.constant 0 : index
    %c0_55 = arith.constant 0 : index
    %44 = vector.load %arg7[%c0_54, %c0_55] : memref<128x128xf32, #tpu.memory_space<vmem>>, vector<128x128xf32>
    %cst_56 = arith.constant dense<0.000000e+00> : vector<1x128xf32>
    %45 = tpu.matmul %40, %44, %cst_56 {dimension_numbers = #tpu.dot_dimension_numbers<[1], [0], [0], [1], [0, 0, 1, 1], [], []>} : vector<1x128xf32>, vector<128x128xf32>, vector<1x128xf32> -> vector<1x128xf32>
    %cst_57 = arith.constant 0.001953125 : f32
    %46 = vector.broadcast %cst_57 : f32 to vector<1x128xf32>
    %47 = arith.mulf %45, %46 : vector<1x128xf32>
    %c0_58 = arith.constant 0 : index
    %c0_59 = arith.constant 0 : index
    %48 = vector.load %arg7[%c0_58, %c0_59] : memref<128x128xf32, #tpu.memory_space<vmem>>, vector<128x128xf32>
    %cst_60 = arith.constant dense<0.000000e+00> : vector<1x128xf32>
    %49 = tpu.matmul %43, %48, %cst_60 {dimension_numbers = #tpu.dot_dimension_numbers<[1], [0], [0], [1], [0, 0, 1, 1], [], []>} : vector<1x128xf32>, vector<128x128xf32>, vector<1x128xf32> -> vector<1x128xf32>
    %cst_61 = arith.constant 0.001953125 : f32
    %50 = vector.broadcast %cst_61 : f32 to vector<1x128xf32>
    %51 = arith.mulf %49, %50 : vector<1x128xf32>
    %52 = arith.mulf %47, %47 : vector<1x128xf32>
    %53 = arith.subf %51, %52 : vector<1x128xf32>
    %cst_62 = arith.constant 0.000000e+00 : f32
    %54 = vector.broadcast %cst_62 : f32 to vector<1x128xf32>
    %55 = arith.maximumf %53, %54 : vector<1x128xf32>
    %cst_63 = arith.constant 9.99999974E-6 : f32
    %56 = vector.broadcast %cst_63 : f32 to vector<1x128xf32>
    %57 = arith.addf %55, %56 : vector<1x128xf32>
    %58 = math.rsqrt %57 : vector<1x128xf32>
    %59 = arith.mulf %37, %58 : vector<1x128xf32>
    %60 = arith.mulf %47, %59 : vector<1x128xf32>
    %61 = arith.subf %38, %60 : vector<1x128xf32>
    %cst_64 = arith.constant 0.000000e+00 : f32
    %62 = vector.broadcast %cst_64 : f32 to vector<18x128xf32>
    %c0_65 = arith.constant 0 : index
    %c0_66 = arith.constant 0 : index
    %63 = vector.load %arg11[%c0_65, %c0_66] : memref<18x128xf32, #tpu.memory_space<vmem>>, vector<18x128xf32>
    tpu.vector_store %arg11[%c0_65, %c0_66], %62 {strides = array<i32>} : memref<18x128xf32, #tpu.memory_space<vmem>>, vector<18x128xf32>,
    %c0_67 = arith.constant 0 : index
    %c0_68 = arith.constant 0 : index
    %64 = vector.load %arg10[%c0_67, %c0_68] : memref<32x128xf32, #tpu.memory_space<vmem>>, vector<16x128xf32>
    %65 = vector.broadcast %59 : vector<1x128xf32> to vector<16x128xf32>
    %66 = arith.mulf %64, %65 : vector<16x128xf32>
    %67 = vector.broadcast %61 : vector<1x128xf32> to vector<16x128xf32>
    %68 = arith.addf %66, %67 : vector<16x128xf32>
    %cst_69 = arith.constant 0.000000e+00 : f32
    %69 = vector.broadcast %cst_69 : f32 to vector<16x128xf32>
    %70 = arith.maximumf %68, %69 : vector<16x128xf32>
    %c1_70 = arith.constant 1 : index
    %c0_71 = arith.constant 0 : index
    %71 = vector.load %arg11[%c1_70, %c0_71] : memref<18x128xf32, #tpu.memory_space<vmem>>, vector<16x128xf32>
    tpu.vector_store %arg11[%c1_70, %c0_71], %70 {strides = array<i32>} : memref<18x128xf32, #tpu.memory_space<vmem>>, vector<16x128xf32>,
    %c0_72 = arith.constant 0 : index
    %c0_73 = arith.constant 0 : index
    %72 = vector.load %arg11[%c0_72, %c0_73] : memref<18x128xf32, #tpu.memory_space<vmem>>, vector<16x128xf32>
    %c0_74 = arith.constant 0 : index
    %c0_75 = arith.constant 0 : index
    %c0_76 = arith.constant 0 : index
    %73 = vector.load %arg2[%c0_74, %c0_75, %c0_76] : memref<3x128x128xf32, #tpu.memory_space<vmem>>, vector<1x128x128xf32>
    %74 = vector.shape_cast %73 : vector<1x128x128xf32> to vector<128x128xf32>
    %cst_77 = arith.constant dense<0.000000e+00> : vector<16x128xf32>
    %75 = tpu.matmul %72, %74, %cst_77 {dimension_numbers = #tpu.dot_dimension_numbers<[1], [0], [0], [1], [0, 0, 1, 1], [], []>} : vector<16x128xf32>, vector<128x128xf32>, vector<16x128xf32> -> vector<16x128xf32>
    %c1_78 = arith.constant 1 : index
    %c0_79 = arith.constant 0 : index
    %76 = vector.load %arg11[%c1_78, %c0_79] : memref<18x128xf32, #tpu.memory_space<vmem>>, vector<16x128xf32>
    %c1_80 = arith.constant 1 : index
    %c0_81 = arith.constant 0 : index
    %c0_82 = arith.constant 0 : index
    %77 = vector.load %arg2[%c1_80, %c0_81, %c0_82] : memref<3x128x128xf32, #tpu.memory_space<vmem>>, vector<1x128x128xf32>
    %78 = vector.shape_cast %77 : vector<1x128x128xf32> to vector<128x128xf32>
    %cst_83 = arith.constant dense<0.000000e+00> : vector<16x128xf32>
    %79 = tpu.matmul %76, %78, %cst_83 {dimension_numbers = #tpu.dot_dimension_numbers<[1], [0], [0], [1], [0, 0, 1, 1], [], []>} : vector<16x128xf32>, vector<128x128xf32>, vector<16x128xf32> -> vector<16x128xf32>
    %80 = arith.addf %75, %79 : vector<16x128xf32>
    %c2_84 = arith.constant 2 : index
    %c0_85 = arith.constant 0 : index
    %81 = vector.load %arg11[%c2_84, %c0_85] : memref<18x128xf32, #tpu.memory_space<vmem>>, vector<16x128xf32>
    %c2_86 = arith.constant 2 : index
    %c0_87 = arith.constant 0 : index
    %c0_88 = arith.constant 0 : index
    %82 = vector.load %arg2[%c2_86, %c0_87, %c0_88] : memref<3x128x128xf32, #tpu.memory_space<vmem>>, vector<1x128x128xf32>
    %83 = vector.shape_cast %82 : vector<1x128x128xf32> to vector<128x128xf32>
    %cst_89 = arith.constant dense<0.000000e+00> : vector<16x128xf32>
    %84 = tpu.matmul %81, %83, %cst_89 {dimension_numbers = #tpu.dot_dimension_numbers<[1], [0], [0], [1], [0, 0, 1, 1], [], []>} : vector<16x128xf32>, vector<128x128xf32>, vector<16x128xf32> -> vector<16x128xf32>
    %85 = arith.addf %80, %84 : vector<16x128xf32>
    %c0_90 = arith.constant 0 : index
    %c0_91 = arith.constant 0 : index
    %86 = vector.load %arg8[%c0_90, %c0_91] : memref<32x128xf32, #tpu.memory_space<vmem>>, vector<16x128xf32>
    tpu.vector_store %arg8[%c0_90, %c0_91], %85 {strides = array<i32>} : memref<32x128xf32, #tpu.memory_space<vmem>>, vector<16x128xf32>,
    %c16_92 = arith.constant 16 : index
    %c0_93 = arith.constant 0 : index
    %87 = vector.load %arg10[%c16_92, %c0_93] : memref<32x128xf32, #tpu.memory_space<vmem>>, vector<16x128xf32>
    %88 = vector.broadcast %59 : vector<1x128xf32> to vector<16x128xf32>
    %89 = arith.mulf %87, %88 : vector<16x128xf32>
    %90 = vector.broadcast %61 : vector<1x128xf32> to vector<16x128xf32>
    %91 = arith.addf %89, %90 : vector<16x128xf32>
    %cst_94 = arith.constant 0.000000e+00 : f32
    %92 = vector.broadcast %cst_94 : f32 to vector<16x128xf32>
    %93 = arith.maximumf %91, %92 : vector<16x128xf32>
    %c1_95 = arith.constant 1 : index
    %c0_96 = arith.constant 0 : index
    %94 = vector.load %arg11[%c1_95, %c0_96] : memref<18x128xf32, #tpu.memory_space<vmem>>, vector<16x128xf32>
    tpu.vector_store %arg11[%c1_95, %c0_96], %93 {strides = array<i32>} : memref<18x128xf32, #tpu.memory_space<vmem>>, vector<16x128xf32>,
    %c0_97 = arith.constant 0 : index
    %c0_98 = arith.constant 0 : index
    %95 = vector.load %arg11[%c0_97, %c0_98] : memref<18x128xf32, #tpu.memory_space<vmem>>, vector<16x128xf32>
    %c0_99 = arith.constant 0 : index
    %c0_100 = arith.constant 0 : index
    %c0_101 = arith.constant 0 : index
    %96 = vector.load %arg2[%c0_99, %c0_100, %c0_101] : memref<3x128x128xf32, #tpu.memory_space<vmem>>, vector<1x128x128xf32>
    %97 = vector.shape_cast %96 : vector<1x128x128xf32> to vector<128x128xf32>
    %cst_102 = arith.constant dense<0.000000e+00> : vector<16x128xf32>
    %98 = tpu.matmul %95, %97, %cst_102 {dimension_numbers = #tpu.dot_dimension_numbers<[1], [0], [0], [1], [0, 0, 1, 1], [], []>} : vector<16x128xf32>, vector<128x128xf32>, vector<16x128xf32> -> vector<16x128xf32>
    %c1_103 = arith.constant 1 : index
    %c0_104 = arith.constant 0 : index
    %99 = vector.load %arg11[%c1_103, %c0_104] : memref<18x128xf32, #tpu.memory_space<vmem>>, vector<16x128xf32>
    %c1_105 = arith.constant 1 : index
    %c0_106 = arith.constant 0 : index
    %c0_107 = arith.constant 0 : index
    %100 = vector.load %arg2[%c1_105, %c0_106, %c0_107] : memref<3x128x128xf32, #tpu.memory_space<vmem>>, vector<1x128x128xf32>
    %101 = vector.shape_cast %100 : vector<1x128x128xf32> to vector<128x128xf32>
    %cst_108 = arith.constant dense<0.000000e+00> : vector<16x128xf32>
    %102 = tpu.matmul %99, %101, %cst_108 {dimension_numbers = #tpu.dot_dimension_numbers<[1], [0], [0], [1], [0, 0, 1, 1], [], []>} : vector<16x128xf32>, vector<128x128xf32>, vector<16x128xf32> -> vector<16x128xf32>
    %103 = arith.addf %98, %102 : vector<16x128xf32>
    %c2_109 = arith.constant 2 : index
    %c0_110 = arith.constant 0 : index
    %104 = vector.load %arg11[%c2_109, %c0_110] : memref<18x128xf32, #tpu.memory_space<vmem>>, vector<16x128xf32>
    %c2_111 = arith.constant 2 : index
    %c0_112 = arith.constant 0 : index
    %c0_113 = arith.constant 0 : index
    %105 = vector.load %arg2[%c2_111, %c0_112, %c0_113] : memref<3x128x128xf32, #tpu.memory_space<vmem>>, vector<1x128x128xf32>
    %106 = vector.shape_cast %105 : vector<1x128x128xf32> to vector<128x128xf32>
    %cst_114 = arith.constant dense<0.000000e+00> : vector<16x128xf32>
    %107 = tpu.matmul %104, %106, %cst_114 {dimension_numbers = #tpu.dot_dimension_numbers<[1], [0], [0], [1], [0, 0, 1, 1], [], []>} : vector<16x128xf32>, vector<128x128xf32>, vector<16x128xf32> -> vector<16x128xf32>
    %108 = arith.addf %103, %107 : vector<16x128xf32>
    %c16_115 = arith.constant 16 : index
    %c0_116 = arith.constant 0 : index
    %109 = vector.load %arg8[%c16_115, %c0_116] : memref<32x128xf32, #tpu.memory_space<vmem>>, vector<16x128xf32>
    tpu.vector_store %arg8[%c16_115, %c0_116], %108 {strides = array<i32>} : memref<32x128xf32, #tpu.memory_space<vmem>>, vector<16x128xf32>,
    %c0_117 = arith.constant 0 : index
    %c0_118 = arith.constant 0 : index
    %110 = vector.load %arg8[%c0_117, %c0_118] : memref<32x128xf32, #tpu.memory_space<vmem>>, vector<32x128xf32>
    %c0_119 = arith.constant 0 : index
    %c0_120 = arith.constant 0 : index
    %111 = vector.load %arg5[%c0_119, %c0_120] : memref<1x128xf32, #tpu.memory_space<vmem>>, vector<1x128xf32>
    %c0_121 = arith.constant 0 : index
    %c0_122 = arith.constant 0 : index
    %112 = vector.load %arg6[%c0_121, %c0_122] : memref<1x128xf32, #tpu.memory_space<vmem>>, vector<1x128xf32>
    %cst_123 = arith.constant dense<0.000000e+00> : vector<128xf32>
    %113 = vector.multi_reduction <add>, %110, %cst_123 [0] : vector<32x128xf32> to vector<128xf32>
    %114 = vector.shape_cast %113 : vector<128xf32> to vector<1x128xf32>
    %115 = arith.mulf %110, %110 : vector<32x128xf32>
    %cst_124 = arith.constant dense<0.000000e+00> : vector<128xf32>
    %116 = vector.multi_reduction <add>, %115, %cst_124 [0] : vector<32x128xf32> to vector<128xf32>
    %117 = vector.shape_cast %116 : vector<128xf32> to vector<1x128xf32>
    %c0_125 = arith.constant 0 : index
    %c0_126 = arith.constant 0 : index
    %118 = vector.load %arg7[%c0_125, %c0_126] : memref<128x128xf32, #tpu.memory_space<vmem>>, vector<128x128xf32>
    %cst_127 = arith.constant dense<0.000000e+00> : vector<1x128xf32>
    %119 = tpu.matmul %114, %118, %cst_127 {dimension_numbers = #tpu.dot_dimension_numbers<[1], [0], [0], [1], [0, 0, 1, 1], [], []>} : vector<1x128xf32>, vector<128x128xf32>, vector<1x128xf32> -> vector<1x128xf32>
    %cst_128 = arith.constant 0.001953125 : f32
    %120 = vector.broadcast %cst_128 : f32 to vector<1x128xf32>
    %121 = arith.mulf %119, %120 : vector<1x128xf32>
    %c0_129 = arith.constant 0 : index
    %c0_130 = arith.constant 0 : index
    %122 = vector.load %arg7[%c0_129, %c0_130] : memref<128x128xf32, #tpu.memory_space<vmem>>, vector<128x128xf32>
    %cst_131 = arith.constant dense<0.000000e+00> : vector<1x128xf32>
    %123 = tpu.matmul %117, %122, %cst_131 {dimension_numbers = #tpu.dot_dimension_numbers<[1], [0], [0], [1], [0, 0, 1, 1], [], []>} : vector<1x128xf32>, vector<128x128xf32>, vector<1x128xf32> -> vector<1x128xf32>
    %cst_132 = arith.constant 0.001953125 : f32
    %124 = vector.broadcast %cst_132 : f32 to vector<1x128xf32>
    %125 = arith.mulf %123, %124 : vector<1x128xf32>
    %126 = arith.mulf %121, %121 : vector<1x128xf32>
    %127 = arith.subf %125, %126 : vector<1x128xf32>
    %cst_133 = arith.constant 0.000000e+00 : f32
    %128 = vector.broadcast %cst_133 : f32 to vector<1x128xf32>
    %129 = arith.maximumf %127, %128 : vector<1x128xf32>
    %cst_134 = arith.constant 9.99999974E-6 : f32
    %130 = vector.broadcast %cst_134 : f32 to vector<1x128xf32>
    %131 = arith.addf %129, %130 : vector<1x128xf32>
    %132 = math.rsqrt %131 : vector<1x128xf32>
    %133 = arith.mulf %111, %132 : vector<1x128xf32>
    %134 = arith.mulf %121, %133 : vector<1x128xf32>
    %135 = arith.subf %112, %134 : vector<1x128xf32>
    %c0_135 = arith.constant 0 : index
    %c0_136 = arith.constant 0 : index
    %136 = vector.load %arg8[%c0_135, %c0_136] : memref<32x128xf32, #tpu.memory_space<vmem>>, vector<32x128xf32>
    %137 = vector.broadcast %133 : vector<1x128xf32> to vector<32x128xf32>
    %138 = arith.mulf %136, %137 : vector<32x128xf32>
    %139 = vector.broadcast %135 : vector<1x128xf32> to vector<32x128xf32>
    %140 = arith.addf %138, %139 : vector<32x128xf32>
    %cst_137 = arith.constant 0.000000e+00 : f32
    %141 = vector.broadcast %cst_137 : f32 to vector<32x128xf32>
    %142 = arith.maximumf %140, %141 : vector<32x128xf32>
    %c0_138 = arith.constant 0 : index
    %c0_139 = arith.constant 0 : index
    %143 = vector.load %arg8[%c0_138, %c0_139] : memref<32x128xf32, #tpu.memory_space<vmem>>, vector<32x128xf32>
    tpu.vector_store %arg8[%c0_138, %c0_139], %142 {strides = array<i32>} : memref<32x128xf32, #tpu.memory_space<vmem>>, vector<32x128xf32>,
    return
  }
}

</mosaic_0001>

<bundles_post_ra>
// kernel: conv_block_forward.1
= control target key start
LH: loop header
LB: loop body
LE: loop exit
PB: predicated region body
PF: predicated region fallthrough
CT: control target
= control target key end

     0   :  { %13 = vsyncpa [#allocation6], 0  ;;  %s930_s30 = smov [#allocation5]   ;;  %s931_s10 = smov 128   ;;  %s1441_s0 = inlined_call_operand.vmem [shape: f32[32,64], index: 0, kind: input, shape index: {}]   ;;  %s1442_s1 = inlined_call_operand.hbm [shape: f32[3,64,128], index: 1, kind: input, shape index: {}]   ;;  %s1443_s2 = inlined_call_operand.vmem [shape: f32[3,128,128], index: 2, kind: input, shape index: {}]   ;;  %s1444_s3 = inlined_call_operand.vmem [shape: f32[1,128], index: 3, kind: input, shape index: {}]   ;;  %s1445_s4 = inlined_call_operand.vmem [shape: f32[1,128], index: 4, kind: input, shape index: {}]   ;;  %s1446_s5 = inlined_call_operand.vmem [shape: f32[1,128], index: 5, kind: input, shape index: {}]   ;;  %s1447_s6 = inlined_call_operand.vmem [shape: f32[1,128], index: 6, kind: input, shape index: {}]   ;;  %s1448_s7 = inlined_call_operand.vmem [shape: f32[128,128], index: 7, kind: input, shape index: {}]   ;;  %s1449_s8 = inlined_call_operand.vmem [shape: f32[32,128], index: 8, kind: output, shape index: {}]  }
   0x1   :  { %s20_s29 = sshll.u32 %s1442_s1, 4  ;;  %s22_s9 = sshll.u32 %s930_s30, 4  ;;  %s21_s29 = int_to_ptr.hbm [resolvable:$true] %s20_s29  ;;  %s23_s9 = int_to_ptr.vmem [resolvable:$true] %s22_s9 }
   0x2   :  { %s932_s11 = smov 8  }
   0x3   :  { %28 = dma.hbm_to_vmem [thread:$0]  %s21_s29, 3072, %s23_s9, [#allocation6], %s931_s10, %s931_s10, %s932_s11  }
   0x4   :  { %928 = dma.done.wait [#allocation6], 3072  }
   0x5   :  { %929 = vsyncadd [#allocation6], 4294964224  ;;  %vm45_vm0 = vcmask 523264   ;;  %v933_v0 = vmov 0.0   ;;  %vm48_vm1 = vcmask 517120   ;;  %v74_v1 = vld [vmem:[#allocation5 + $0x78] sm:$0xff] }
   0x6   :  { %46 = vst.msk [vmem:[#allocation2] sm:$0xff] %vm45_vm0, %v933_v0  ;;  %v63_v2 = vld [vmem:[#allocation5 + $0x38] sm:$0xff]  ;;  %89 = vmatpush.msra.mxu0 %v74_v1  ;;  %v73_v4 = vld [vmem:[#allocation5 + $0x70] sm:$0xff]  ;;  %v72_v7 = vld [vmem:[#allocation5 + $0x68] sm:$0xff]  ;;  %215 = vmatpush.msra.mxu3 %v74_v1 }
   0x7   :  { %47 = vst.msk [vmem:[#allocation2 + $0x8] sm:$0xff] %vm45_vm0, %v933_v0  ;;  %v984_v3 = vld [vmem:[#allocation5 + $0xb8] sm:$0xff]  ;;  %118 = vmatpush.msra.mxu1 %v63_v2  ;;  %v986_v5 = vld [vmem:[#allocation5 + $0x30] sm:$0xff]  ;;  %v991_v8 = vld [vmem:[#allocation5 + $0x28] sm:$0xff] }
   0x8   :  { %405 = vst [vmem:[#allocation4] sm:$0xff] %v933_v0  ;;  %v988_v6 = vld [vmem:[#allocation5 + $0xb0] sm:$0xff]  ;;  %158 = vmatpush.msra.mxu2 %v984_v3  ;;  %90 = vmatpush.msra.mxu0 %v73_v4  ;;  %v994_v9 = vld [vmem:[#allocation5 + $0xa8] sm:$0xff]  ;;  %v71_v10 = vld [vmem:[#allocation5 + $0x60] sm:$0xff] }
   0x9   :  { %406 = vst [vmem:[#allocation4 + $0x8] sm:$0xff] %v933_v0  ;;  %119 = vmatpush.msra.mxu1 %v986_v5  ;;  %v60_v11 = vld [vmem:[#allocation5 + $0x20] sm:$0xff]  ;;  %216 = vmatpush.msra.mxu3 %v73_v4  ;;  %v70_v13 = vld [vmem:[#allocation5 + $0x58] sm:$0xff]  ;;  %v69_v16 = vld [vmem:[#allocation5 + $0x50] sm:$0xff] }
   0xa   :  { %407 = vst [vmem:[#allocation4 + $0x10] sm:$0x3] %v933_v0  ;;  %159 = vmatpush.msra.mxu2 %v988_v6  ;;  %91 = vmatpush.msra.mxu0 %v72_v7  ;;  %v998_v12 = vld [vmem:[#allocation5 + $0xa0] sm:$0xff]  ;;  %v59_v14 = vld [vmem:[#allocation5 + $0x18] sm:$0xff]  ;;  %v58_v17 = vld [vmem:[#allocation5 + $0x10] sm:$0xff] }
   0xb   :  { %49 = vst.msk [vmem:[#allocation2 + $0x10] sm:$0x3] %vm48_vm1, %v933_v0  ;;  %120 = vmatpush.msra.mxu1 %v991_v8  ;;  %217 = vmatpush.msra.mxu3 %v72_v7  ;;  %v139_v15 = vld [vmem:[#allocation5 + $0x98] sm:$0xff]  ;;  %v50_v18 = vld [vmem:[%s1441_s0] sm:$0xff]  ;;  %v68_v21 = vld [vmem:[#allocation5 + $0x48] sm:$0xff] }
   0xc   :  { %160 = vmatpush.msra.mxu2 %v994_v9  ;;  %92 = vmatpush.msra.mxu0 %v71_v10  ;;  %v51_v19 = vld [vmem:[%s1441_s0 + $0x8] sm:$0xff]  ;;  %v138_v20 = vld [vmem:[#allocation5 + $0x90] sm:$0xff]  ;;  %52 = vst.msk [vmem:[#allocation2 + $0x1] sm:$0xff] %vm45_vm0, %v50_v18  ;;  %v57_v22 = vld [vmem:[#allocation5 + $0x8] sm:$0xff] }
   0xd   :  { %121 = vmatpush.msra.mxu1 %v60_v11  ;;  %218 = vmatpush.msra.mxu3 %v71_v10  ;;  %53 = vst.msk [vmem:[#allocation2 + $0x9] sm:$0xff] %vm45_vm0, %v51_v19  ;;  %v137_v23 = vld [vmem:[#allocation5 + $0x88] sm:$0xff]  ;;  %v67_v24 = vld [vmem:[#allocation5 + $0x40] sm:$0xff]  ;;  %v1053_v43 = vld [vmem:[%s1448_s7 + $0x68] sm:$0xff] }
   0xe   :  { %161 = vmatpush.msra.mxu2 %v998_v12  ;;  %93 = vmatpush.msra.mxu0 %v70_v13  ;;  %v56_v25 = vld [vmem:[#allocation5] sm:$0xff]  ;;  %v178_v30 = vld [vmem:[%s1441_s0 + $0x18] sm:$0xff]  ;;  %v1060_v44 = vld [vmem:[%s1448_s7 + $0x60] sm:$0xff] }
   0xf   :  { %122 = vmatpush.msra.mxu1 %v59_v14  ;;  %219 = vmatpush.msra.mxu3 %v70_v13  ;;  %v136_v26 = vld [vmem:[#allocation5 + $0x80] sm:$0xff]  ;;  %v1039_v41 = vld [vmem:[%s1448_s7 + $0x78] sm:$0xff]  ;;  %v1081_v47 = vld [vmem:[%s1448_s7 + $0x48] sm:$0xff] }
  0x10   :  { %162 = vmatpush.msra.mxu2 %v139_v15  ;;  %94 = vmatpush.msra.mxu0 %v69_v16  ;;  %v177_v27 = vld [vmem:[%s1441_s0 + $0x10] sm:$0xff]  ;;  %v1067_v45 = vld [vmem:[%s1448_s7 + $0x58] sm:$0xff]  ;;  %v1088_v48 = vld [vmem:[%s1448_s7 + $0x40] sm:$0xff] }
  0x11   :  { %123 = vmatpush.msra.mxu1 %v58_v17  ;;  %220 = vmatpush.msra.mxu3 %v69_v16  ;;  %v1046_v42 = vld [vmem:[%s1448_s7 + $0x70] sm:$0xff]  ;;  %v1095_v49 = vld [vmem:[%s1448_s7 + $0x38] sm:$0xff]  ;;  %v1109_v53 = vld [vmem:[%s1448_s7 + $0x28] sm:$0xff] }
  0x12   :  { %163 = vmatpush.msra.mxu2 %v138_v20  ;;  %95 = vmatpush.msra.mxu0 %v68_v21  ;;  %v1074_v46 = vld [vmem:[%s1448_s7 + $0x50] sm:$0xff]  ;;  %v1115_v54 = vld [vmem:[%s1448_s7 + $0x20] sm:$0xff]  ;;  %v1121_v55 = vld [vmem:[%s1448_s7 + $0x18] sm:$0xff] }
  0x13   :  { %124 = vmatpush.msra.mxu1 %v57_v22  ;;  %221 = vmatpush.msra.mxu3 %v68_v21  ;;  %v64_v28 = vld [vmem:[#allocation2 + $0x1] sm:$0xff]  ;;  %v1102_v50 = vld [vmem:[%s1448_s7 + $0x30] sm:$0xff] }
  0x14   :  { %164 = vmatpush.msra.mxu2 %v137_v23  ;;  %96 = vmatpush.msra.mxu0 %v67_v24  ;;  %v54_v29 = vld [vmem:[#allocation2] sm:$0xff]  ;;  %v55_v32 = vld [vmem:[#allocation2 + $0x8] sm:$0xff]  ;;  %v1128_v56 = vld [vmem:[%s1448_s7 + $0x10] sm:$0xff] }
  0x15   :  { %125 = vmatpush.msra.mxu1 %v56_v25  ;;  %820 = vmatmul.msk.f32.vlgmr.msra.gmra.mxu0 %vm45_vm0, %v64_v28  ;;  %v133_v31 = vld [vmem:[#allocation2 + $0x2] sm:$0xff]  ;;  %v134_v34 = vld [vmem:[#allocation2 + $0xa] sm:$0xff] }
  0x16   :  { %165 = vmatpush.msra.mxu2 %v136_v26  ;;  %244 = vmatpush.msrb.mxu0 %v63_v2  ;;  %v65_v33 = vld [vmem:[#allocation2 + $0x9] sm:$0xff]  ;;  %179 = vst.msk [vmem:[#allocation2 + $0x1] sm:$0xff] %vm45_vm0, %v177_v27  ;;  %v1142_v60 = vld [vmem:[%s1448_s7] sm:$0xff] }
  0x17   :  { %822 = vmatmul.msk.f32.vlgmr.msra.gmra.mxu1 %vm45_vm0, %v54_v29  ;;  %824 = vmatmul.msk.f32.vlgmr.msra.gmra.mxu2 %vm45_vm0, %v133_v31  ;;  %180 = vst.msk [vmem:[#allocation2 + $0x9] sm:$0xff] %vm45_vm0, %v178_v30  ;;  %v1135_v57 = vld [vmem:[%s1448_s7 + $0x8] sm:$0xff] }
  0x18   :  { %245 = vmatpush.msrb.mxu0 %v986_v5  ;;  %283 = vmatpush.msrb.mxu1 %v984_v3 }
  0x19   :  { %222 = vmatpush.msra.mxu3 %v67_v24  ;;  %346 = vmatpush.msrb.mxu2 %v1039_v41 }
  0x1a   :  { %246 = vmatpush.msrb.mxu0 %v991_v8  ;;  %284 = vmatpush.msrb.mxu1 %v988_v6 }
  0x1b   :  { %367 = vmatpush.msrb.mxu3 %v1039_v41  ;;  %347 = vmatpush.msrb.mxu2 %v1046_v42 }
  0x1c   :  { %247 = vmatpush.msrb.mxu0 %v60_v11  ;;  %285 = vmatpush.msrb.mxu1 %v994_v9 }
  0x1d   :  { %821 = vmatmul.msk.f32.gmra.mxu0 %vm45_vm0, %v65_v33  ;;  %v191_v35 = vld [vmem:[#allocation2 + $0x1] sm:$0xff]  ;;  %368 = vmatpush.msrb.mxu3 %v1046_v42 }
  0x1e   :  { %248 = vmatpush.msrb.mxu0 %v59_v14  ;;  %286 = vmatpush.msrb.mxu1 %v998_v12  ;;  %v181_v36 = vld [vmem:[#allocation2] sm:$0xff]  ;;  %v192_v37 = vld [vmem:[#allocation2 + $0x9] sm:$0xff] }
  0x1f   :  { %823 = vmatmul.msk.f32.gmra.mxu1 %vm45_vm0, %v55_v32  ;;  %825 = vmatmul.msk.f32.gmra.mxu2 %vm45_vm0, %v134_v34  ;;  %v259_v38 = vld [vmem:[#allocation2 + $0x2] sm:$0xff]  ;;  %v260_v40 = vld [vmem:[#allocation2 + $0xa] sm:$0xff] }
  0x20   :  { %826 = vmatmul.msk.f32.vlgmr.msra.gmra.mxu3 %vm45_vm0, %v191_v35  ;;  %249 = vmatpush.msrb.mxu0 %v58_v17  ;;  %v182_v39 = vld [vmem:[#allocation2 + $0x8] sm:$0xff]  ;;  %v847_v35 = vld [vmem:[%s1443_s2 + $0xf8] sm:$0xff] }
  0x21   :  { %287 = vmatpush.msrb.mxu1 %v139_v15  ;;  %348 = vmatpush.msrb.mxu2 %v1053_v43 }
  0x22   :  { %250 = vmatpush.msrb.mxu0 %v57_v22  ;;  %369 = vmatpush.msrb.mxu3 %v1053_v43 }
  0x23   :  { %288 = vmatpush.msrb.mxu1 %v138_v20  ;;  %349 = vmatpush.msrb.mxu2 %v1060_v44 }
  0x24   :  { %251 = vmatpush.msrb.mxu0 %v56_v25  ;;  %370 = vmatpush.msrb.mxu3 %v1060_v44 }
  0x25   :  { %289 = vmatpush.msrb.mxu1 %v137_v23  ;;  %828 = vmatmul.msk.f32.vlgmr.msrb.gmra.mxu0 %vm45_vm0, %v181_v36  ;;  %v846_v36 = vld [vmem:[%s1443_s2 + $0xf0] sm:$0xff] }
  0x26   :  { %350 = vmatpush.msrb.mxu2 %v1067_v45  ;;  %371 = vmatpush.msrb.mxu3 %v1067_v45 }
  0x27   :  { %290 = vmatpush.msrb.mxu1 %v136_v26  ;;  %461 = vmatpush.msra.mxu0 %v847_v35 }
  0x28   :  { %827 = vmatmul.msk.f32.gmra.mxu3 %vm45_vm0, %v192_v37  ;;  %830 = vmatmul.msk.f32.vlgmr.msrb.gmra.mxu1 %vm45_vm0, %v259_v38  ;;  %v845_v37 = vld [vmem:[%s1443_s2 + $0xe8] sm:$0xff]  ;;  %v844_v38 = vld [vmem:[%s1443_s2 + $0xe0] sm:$0xff] }
  0x29   :  { %351 = vmatpush.msrb.mxu2 %v1074_v46  ;;  %372 = vmatpush.msrb.mxu3 %v1074_v46 }
  0x2a   :  { %462 = vmatpush.msra.mxu0 %v846_v36 }
  0x2b   :  { %352 = vmatpush.msrb.mxu2 %v1081_v47  ;;  %373 = vmatpush.msrb.mxu3 %v1081_v47 }
  0x2c   :  { %463 = vmatpush.msra.mxu0 %v845_v37 }
  0x2d   :  { %829 = vmatmul.msk.f32.gmra.mxu0 %vm45_vm0, %v182_v39  ;;  %353 = vmatpush.msrb.mxu2 %v1088_v48  ;;  %v1183_v39 = vld [vmem:[%s1443_s2 + $0x78] sm:$0xff] }
  0x2e   :  { %374 = vmatpush.msrb.mxu3 %v1088_v48  ;;  %464 = vmatpush.msra.mxu0 %v844_v38 }
  0x2f   :  { %354 = vmatpush.msrb.mxu2 %v1095_v49  ;;  %484 = vmatpush.msra.mxu1 %v1183_v39 }
  0x30   :  { %831 = vmatmul.msk.f32.gmra.mxu1 %vm45_vm0, %v260_v40  ;;  %375 = vmatpush.msrb.mxu3 %v1095_v49  ;;  %v843_v40 = vld [vmem:[%s1443_s2 + $0xd8] sm:$0xff] }
  0x31   :  { %355 = vmatpush.msrb.mxu2 %v1102_v50  ;;  %465 = vmatpush.msra.mxu0 %v843_v40 }
  0x32   :  { %376 = vmatpush.msrb.mxu3 %v1102_v50 }
  0x33   :  { %356 = vmatpush.msrb.mxu2 %v1109_v53 }
  0x34   :  { %377 = vmatpush.msrb.mxu3 %v1109_v53 }
  0x35   :  { %357 = vmatpush.msrb.mxu2 %v1115_v54 }
  0x36   :  { %378 = vmatpush.msrb.mxu3 %v1115_v54 }
  0x37   :  { %358 = vmatpush.msrb.mxu2 %v1121_v55 }
  0x38   :  { %379 = vmatpush.msrb.mxu3 %v1121_v55 }
  0x39   :  { %359 = vmatpush.msrb.mxu2 %v1128_v56 }
  0x3a   :  { %380 = vmatpush.msrb.mxu3 %v1128_v56 }
  0x3b   :  { %360 = vmatpush.msrb.mxu2 %v1135_v57 }
  0x3c   :  { %381 = vmatpush.msrb.mxu3 %v1135_v57 }
  0x3d   :  { %361 = vmatpush.msrb.mxu2 %v1142_v60 }
  0x3e   :  { %382 = vmatpush.msrb.mxu3 %v1142_v60 }
  0x40   :  { %599 = vmatpush.msra.mxu3 %v847_v35 }
  0x42   :  { %600 = vmatpush.msra.mxu3 %v846_v36 }
  0x44   :  { %601 = vmatpush.msra.mxu3 %v845_v37  ;;  %v854_v37 = vld [vmem:[%s1443_s2 + $0x130] sm:$0xff] }
  0x46   :  { %602 = vmatpush.msra.mxu3 %v844_v38 }
  0x48   :  { %603 = vmatpush.msra.mxu3 %v843_v40 }
  0x92   :  { %v98_v51 = vpop.f32.mrf.mxu0 }
  0x94   :  { %v127_v52 = vpop.f32.mrf.mxu1 }
  0x95   :  { %v128_v4 = vadd.f32 %v127_v52, %v98_v51  ;;  %v1192_v51 = vld [vmem:[%s1443_s2 + $0x70] sm:$0xff] }
  0x96   :  { %v842_v52 = vld [vmem:[%s1443_s2 + $0xd0] sm:$0xff]  ;;  %485 = vmatpush.msra.mxu1 %v1192_v51 }
  0x97   :  { %466 = vmatpush.msra.mxu0 %v842_v52  ;;  %604 = vmatpush.msra.mxu3 %v842_v52 }
  0x9a   :  { %v167_v58 = vpop.f32.mrf.mxu2  ;;  %v101_v59 = vpop.f32.mrf.mxu0 }
  0x9b   :  { %v1150_v6 = vadd.f32 %v167_v58, %v128_v4  ;;  %v1201_v58 = vld [vmem:[%s1443_s2 + $0x68] sm:$0xff] }
  0x9c   :  { %v130_v61 = vpop.f32.mrf.mxu1  ;;  %486 = vmatpush.msra.mxu1 %v1201_v58  ;;  %v837_v4 = vld [vmem:[%s1443_s2 + $0xa8] sm:$0xff] }
  0x9d   :  { %v131_v1 = vadd.f32 %v130_v61, %v101_v59  ;;  %v317_v11 = vmul.f32 %v1150_v6, %v1150_v6  ;;  %v841_v59 = vld [vmem:[%s1443_s2 + $0xc8] sm:$0xff]  ;;  %v1210_v61 = vld [vmem:[%s1443_s2 + $0x60] sm:$0xff] }
  0x9e   :  { %467 = vmatpush.msra.mxu0 %v841_v59  ;;  %605 = vmatpush.msra.mxu3 %v841_v59  ;;  %v850_v59 = vld [vmem:[%s1443_s2 + $0x110] sm:$0xff] }
  0x9f   :  { %487 = vmatpush.msra.mxu1 %v1210_v61 }
  0xa2   :  { %v170_v62 = vpop.f32.mrf.mxu2  ;;  %v253_v0 = vpop.f32.mrf.mxu0 }
  0xa3   :  { %v224_v63 = vpop.f32.mrf.mxu3  ;;  %v1148_v5 = vadd.f32 %v170_v62, %v131_v1  ;;  %v840_v62 = vld [vmem:[%s1443_s2 + $0xc0] sm:$0xff]  ;;  %v1228_v1 = vld [vmem:[%s1443_s2 + $0x50] sm:$0xff] }
  0xa4   :  { %v254_v2 = vadd.f32 %v253_v0, %v224_v63  ;;  %v1219_v63 = vld [vmem:[%s1443_s2 + $0x58] sm:$0xff]  ;;  %468 = vmatpush.msra.mxu0 %v840_v62  ;;  %606 = vmatpush.msra.mxu3 %v840_v62  ;;  %v848_v62 = vld [vmem:[%s1443_s2 + $0x100] sm:$0xff] }
  0xa5   :  { %v292_v3 = vpop.f32.mrf.mxu1  ;;  %v318_v8 = vmul.f32 %v1148_v5, %v1148_v5  ;;  %v308_v12 = vadd.f32 %v1148_v5, %v1150_v6  ;;  %v839_v0 = vld [vmem:[%s1443_s2 + $0xb8] sm:$0xff]  ;;  %488 = vmatpush.msra.mxu1 %v1219_v63 }
  0xa6   :  { %v1152_v7 = vadd.f32 %v292_v3, %v254_v2  ;;  %469 = vmatpush.msra.mxu0 %v839_v0  ;;  %v838_v2 = vld [vmem:[%s1443_s2 + $0xb0] sm:$0xff]  ;;  %607 = vmatpush.msra.mxu3 %v839_v0  ;;  %v1237_v3 = vld [vmem:[%s1443_s2 + $0x48] sm:$0xff] }
  0xa7   :  { %v321_v16 = vadd.f32 %v318_v8, %v317_v11  ;;  %489 = vmatpush.msra.mxu1 %v1228_v1  ;;  %v1246_v8 = vld [vmem:[%s1443_s2 + $0x40] sm:$0xff]  ;;  %v1258_v11 = vld [vmem:[%s1443_s2 + $0x38] sm:$0xff] }
  0xa8   :  { %v319_v13 = vmul.f32 %v1152_v7, %v1152_v7  ;;  %v309_v17 = vadd.f32 %v308_v12, %v1152_v7  ;;  %470 = vmatpush.msra.mxu0 %v838_v2  ;;  %608 = vmatpush.msra.mxu3 %v838_v2  ;;  %v835_v12 = vld [vmem:[%s1443_s2 + $0x98] sm:$0xff] }
  0xa9   :  { %490 = vmatpush.msra.mxu1 %v1237_v3 }
  0xaa   :  { %v256_v10 = vpop.f32.mrf.mxu0  ;;  %v322_v19 = vadd.f32 %v321_v16, %v319_v13  ;;  %471 = vmatpush.msra.mxu0 %v837_v4  ;;  %609 = vmatpush.msra.mxu3 %v837_v4  ;;  %v862_v13 = vld [vmem:[%s1443_s2 + $0x170] sm:$0xff]  ;;  %v861_v16 = vld [vmem:[%s1443_s2 + $0x168] sm:$0xff]  ;;  %v307_v4 = vld [vmem:[%s1445_s4] sm:$0x1] }
  0xab   :  { %v227_v9 = vpop.f32.mrf.mxu3  ;;  %491 = vmatpush.msra.mxu1 %v1246_v8 }
  0xac   :  { %v257_v14 = vadd.f32 %v256_v10, %v227_v9  ;;  %v836_v9 = vld [vmem:[%s1443_s2 + $0xa0] sm:$0xff]  ;;  %v863_v10 = vld [vmem:[%s1443_s2 + $0x178] sm:$0xff] }
  0xad   :  { %v295_v15 = vpop.f32.mrf.mxu1  ;;  %526 = vmatpush.msra.mxu2 %v863_v10  ;;  %472 = vmatpush.msra.mxu0 %v836_v9 }
  0xae   :  { %v1163_v18 = vadd.f32 %v295_v15, %v257_v14  ;;  %492 = vmatpush.msra.mxu1 %v1258_v11  ;;  %610 = vmatpush.msra.mxu3 %v836_v9  ;;  %v1270_v14 = vld [vmem:[%s1443_s2 + $0x30] sm:$0xff] }
  0xaf   :  { %527 = vmatpush.msra.mxu2 %v862_v13  ;;  %473 = vmatpush.msra.mxu0 %v835_v12  ;;  %v834_v15 = vld [vmem:[%s1443_s2 + $0x90] sm:$0xff] }
  0xb0   :  { %v310_v20 = vadd.f32 %v309_v17, %v1163_v18  ;;  %v320_v21 = vmul.f32 %v1163_v18, %v1163_v18  ;;  %493 = vmatpush.msra.mxu1 %v1270_v14  ;;  %611 = vmatpush.msra.mxu3 %v835_v12  ;;  %v1282_v17 = vld [vmem:[%s1443_s2 + $0x28] sm:$0xff] }
  0xb1   :  { %528 = vmatpush.msra.mxu2 %v861_v16  ;;  %474 = vmatpush.msra.mxu0 %v834_v15 }
  0xb2   :  { %v311_v22 = vrot.slane %v310_v20, 4  ;;  %v323_v23 = vadd.f32 %v322_v19, %v320_v21  ;;  %v833_v19 = vld [vmem:[%s1443_s2 + $0x88] sm:$0xff]  ;;  %494 = vmatpush.msra.mxu1 %v1282_v17  ;;  %612 = vmatpush.msra.mxu3 %v834_v15  ;;  %v1294_v21 = vld [vmem:[%s1443_s2 + $0x20] sm:$0xff] }
  0xb3   :  { %475 = vmatpush.msra.mxu0 %v833_v19 }
  0xb4   :  { %v312_v24 = vadd.f32 %v311_v22, %v310_v20  ;;  %v324_v25 = vrot.slane %v323_v23, 4  ;;  %v860_v20 = vld [vmem:[%s1443_s2 + $0x160] sm:$0xff]  ;;  %495 = vmatpush.msra.mxu1 %v1294_v21  ;;  %613 = vmatpush.msra.mxu3 %v833_v19 }
  0xb5   :  { %529 = vmatpush.msra.mxu2 %v860_v20  ;;  %v832_v22 = vld [vmem:[%s1443_s2 + $0x80] sm:$0xff] }
  0xb6   :  { %v313_v26 = vrot.slane %v312_v24, 2  ;;  %v325_v27 = vadd.f32 %v324_v25, %v323_v23  ;;  %v859_v23 = vld [vmem:[%s1443_s2 + $0x158] sm:$0xff]  ;;  %476 = vmatpush.msra.mxu0 %v832_v22  ;;  %v858_v25 = vld [vmem:[%s1443_s2 + $0x150] sm:$0xff]  ;;  %614 = vmatpush.msra.mxu3 %v832_v22 }
  0xb7   :  { %530 = vmatpush.msra.mxu2 %v859_v23 }
  0xb8   :  { %v314_v28 = vadd.f32 %v313_v26, %v312_v24  ;;  %v326_v29 = vrot.slane %v325_v27, 2  ;;  %v1306_v24 = vld [vmem:[%s1443_s2 + $0x18] sm:$0xff]  ;;  %622 = vmatpush.msrb.mxu0 %v1183_v39  ;;  %v1316_v26 = vld [vmem:[%s1443_s2 + $0x10] sm:$0xff]  ;;  %v853_v39 = vld [vmem:[%s1443_s2 + $0x128] sm:$0xff] }
  0xb9   :  { %496 = vmatpush.msra.mxu1 %v1306_v24  ;;  %531 = vmatpush.msra.mxu2 %v858_v25 }
  0xba   :  { %v315_v30 = vrot.slane %v314_v28, 1  ;;  %v327_v31 = vadd.f32 %v326_v29, %v325_v27  ;;  %v857_v27 = vld [vmem:[%s1443_s2 + $0x148] sm:$0xff]  ;;  %623 = vmatpush.msrb.mxu0 %v1192_v51  ;;  %v852_v51 = vld [vmem:[%s1443_s2 + $0x120] sm:$0xff] }
  0xbb   :  { %497 = vmatpush.msra.mxu1 %v1316_v26  ;;  %532 = vmatpush.msra.mxu2 %v857_v27 }
  0xbc   :  { %v316_v32 = vadd.f32 %v315_v30, %v314_v28  ;;  %v328_v33 = vrot.slane %v327_v31, 1  ;;  %v1326_v28 = vld [vmem:[%s1443_s2 + $0x8] sm:$0xff]  ;;  %v856_v30 = vld [vmem:[%s1443_s2 + $0x140] sm:$0xff]  ;;  %624 = vmatpush.msrb.mxu0 %v1201_v58  ;;  %v851_v58 = vld [vmem:[%s1443_s2 + $0x118] sm:$0xff] }
  0xbd   :  { %498 = vmatpush.msra.mxu1 %v1326_v28  ;;  %533 = vmatpush.msra.mxu2 %v856_v30 }
  0xbe   :  { %362 = vmatmul.f32.vlgmr.msrb.gmra.mxu2 %v316_v32  ;;  %v329_v34 = vadd.f32 %v328_v33, %v327_v31  ;;  %v1339_v32 = vld [vmem:[%s1443_s2] sm:$0xff]  ;;  %625 = vmatpush.msrb.mxu0 %v1210_v61  ;;  %v849_v61 = vld [vmem:[%s1443_s2 + $0x108] sm:$0xff] }
  0xbf   :  { %499 = vmatpush.msra.mxu1 %v1339_v32 }
  0xc0   :  { %383 = vmatmul.f32.vlgmr.msrb.gmra.mxu3 %v329_v34  ;;  %v855_v34 = vld [vmem:[%s1443_s2 + $0x138] sm:$0xff]  ;;  %626 = vmatpush.msrb.mxu0 %v1219_v63 }
  0xc1   :  { %755 = vmatpush.msrb.mxu3 %v1039_v41  ;;  %534 = vmatpush.msra.mxu2 %v855_v34 }
  0xc2   :  { %663 = vmatpush.msrb.mxu1 %v863_v10  ;;  %627 = vmatpush.msrb.mxu0 %v1228_v1 }
  0xc3   :  { %756 = vmatpush.msrb.mxu3 %v1046_v42  ;;  %535 = vmatpush.msra.mxu2 %v854_v37 }
  0xc4   :  { %664 = vmatpush.msrb.mxu1 %v862_v13  ;;  %628 = vmatpush.msrb.mxu0 %v1237_v3 }
  0xc5   :  { %757 = vmatpush.msrb.mxu3 %v1053_v43  ;;  %536 = vmatpush.msra.mxu2 %v853_v39 }
  0xc6   :  { %665 = vmatpush.msrb.mxu1 %v861_v16  ;;  %629 = vmatpush.msrb.mxu0 %v1246_v8 }
  0xc7   :  { %758 = vmatpush.msrb.mxu3 %v1060_v44  ;;  %537 = vmatpush.msra.mxu2 %v852_v51 }
  0xc8   :  { %666 = vmatpush.msrb.mxu1 %v860_v20  ;;  %630 = vmatpush.msrb.mxu0 %v1258_v11 }
  0xc9   :  { %759 = vmatpush.msrb.mxu3 %v1067_v45  ;;  %538 = vmatpush.msra.mxu2 %v851_v58 }
  0xca   :  { %667 = vmatpush.msrb.mxu1 %v859_v23  ;;  %631 = vmatpush.msrb.mxu0 %v1270_v14 }
  0xcb   :  { %760 = vmatpush.msrb.mxu3 %v1074_v46  ;;  %539 = vmatpush.msra.mxu2 %v850_v59 }
  0xcc   :  { %668 = vmatpush.msrb.mxu1 %v858_v25  ;;  %632 = vmatpush.msrb.mxu0 %v1282_v17 }
  0xcd   :  { %761 = vmatpush.msrb.mxu3 %v1081_v47  ;;  %540 = vmatpush.msra.mxu2 %v849_v61 }
  0xce   :  { %669 = vmatpush.msrb.mxu1 %v857_v27  ;;  %633 = vmatpush.msrb.mxu0 %v1294_v21 }
  0xcf   :  { %762 = vmatpush.msrb.mxu3 %v1088_v48  ;;  %541 = vmatpush.msra.mxu2 %v848_v62 }
  0xd0   :  { %670 = vmatpush.msrb.mxu1 %v856_v30  ;;  %634 = vmatpush.msrb.mxu0 %v1306_v24 }
  0xd1   :  { %763 = vmatpush.msrb.mxu3 %v1095_v49  ;;  %734 = vmatpush.msrb.mxu2 %v1039_v41 }
  0xd2   :  { %671 = vmatpush.msrb.mxu1 %v855_v34  ;;  %635 = vmatpush.msrb.mxu0 %v1316_v26 }
  0xd3   :  { %764 = vmatpush.msrb.mxu3 %v1102_v50  ;;  %735 = vmatpush.msrb.mxu2 %v1046_v42  ;;  %v306_v42 = vld [vmem:[%s1444_s3] sm:$0x1] }
  0xd4   :  { %672 = vmatpush.msrb.mxu1 %v854_v37  ;;  %636 = vmatpush.msrb.mxu0 %v1326_v28 }
  0xd5   :  { %765 = vmatpush.msrb.mxu3 %v1109_v53  ;;  %736 = vmatpush.msrb.mxu2 %v1053_v43 }
  0xd6   :  { %673 = vmatpush.msrb.mxu1 %v853_v39  ;;  %637 = vmatpush.msrb.mxu0 %v1339_v32 }
  0xd7   :  { %766 = vmatpush.msrb.mxu3 %v1115_v54  ;;  %737 = vmatpush.msrb.mxu2 %v1060_v44 }
  0xd8   :  { %674 = vmatpush.msrb.mxu1 %v852_v51 }
  0xd9   :  { %767 = vmatpush.msrb.mxu3 %v1121_v55  ;;  %738 = vmatpush.msrb.mxu2 %v1067_v45 }
  0xda   :  { %675 = vmatpush.msrb.mxu1 %v851_v58 }
  0xdb   :  { %768 = vmatpush.msrb.mxu3 %v1128_v56  ;;  %739 = vmatpush.msrb.mxu2 %v1074_v46 }
  0xdc   :  { %676 = vmatpush.msrb.mxu1 %v850_v59 }
  0xdd   :  { %769 = vmatpush.msrb.mxu3 %v1135_v57  ;;  %740 = vmatpush.msrb.mxu2 %v1081_v47 }
  0xde   :  { %677 = vmatpush.msrb.mxu1 %v849_v61 }
  0xdf   :  { %770 = vmatpush.msrb.mxu3 %v1142_v60  ;;  %741 = vmatpush.msrb.mxu2 %v1088_v48 }
  0xe0   :  { %678 = vmatpush.msrb.mxu1 %v848_v62 }
  0xe1   :  { %742 = vmatpush.msrb.mxu2 %v1095_v49 }
  0xe3   :  { %743 = vmatpush.msrb.mxu2 %v1102_v50 }
  0xe5   :  { %744 = vmatpush.msrb.mxu2 %v1109_v53 }
  0xe7   :  { %745 = vmatpush.msrb.mxu2 %v1115_v54 }
  0xe9   :  { %746 = vmatpush.msrb.mxu2 %v1121_v55 }
  0xeb   :  { %747 = vmatpush.msrb.mxu2 %v1128_v56 }
  0xed   :  { %748 = vmatpush.msrb.mxu2 %v1135_v57 }
  0xef   :  { %749 = vmatpush.msrb.mxu2 %v1142_v60 }
 0x141   :  { %v363_v29 = vpop.f32.mrf.mxu2 }
 0x142   :  { %v1334_v31 = vmul.f32 0.001953125, %v363_v29 }
 0x143   :  { %v384_v33 = vpop.f32.mrf.mxu3 }
 0x144   :  { %v388_v35 = vmul.f32 %v1334_v31, %v1334_v31  ;;  %v387_v36 = vmul.f32 0.001953125, %v384_v33 }
 0x146   :  { %v389_v38 = vsub.f32 %v387_v36, %v388_v35 }
 0x148   :  { %v390_v40 = vmax.f32 %v389_v38, 0.0 }
 0x14a   :  { %v391_v52 = vadd.f32 1e-05, %v390_v40 }
 0x14c   :  { %900 = vrsqrt.f32 %v391_v52  ;;  %vm398_vm3 = vweird.f32 %v391_v52 }
 0x152   :  { %v901_v63 = vpop.eup %900 }
 0x153   :  { %v393_v0 = vmul.f32 %v901_v63, %v391_v52  ;;  %vm399_vm2 = vweird.f32 %v901_v63 }
 0x154   :  { %vm400_vm4 = vmor %vm398_vm3, %vm399_vm2 }
 0x155   :  { %v394_v1 = vmul.f32 %v901_v63, %v393_v0 }
 0x157   :  { %v395_v2 = vmul.f32 0.5, %v394_v1 }
 0x159   :  { %v396_v41 = vsub.f32 1.5, %v395_v2 }
 0x15b   :  { %v397_v3 = vmul.f32 %v901_v63, %v396_v41 }
 0x15d   :  { %v401_v43 = vsel %vm400_vm4, %v901_v63, %v397_v3 }
 0x15e   :  { %v402_v44 = vmul.f32 %v401_v43, %v306_v42 }
 0x160   :  { %v403_v8 = vmul.f32 %v402_v44, %v1334_v31  ;;  %v411_v45 = vperm.slane %v402_v44, 0 }
 0x162   :  { %v404_v9 = vsub.f32 %v307_v4, %v403_v8  ;;  %v413_v46 = vmul.f32 %v411_v45, %v1150_v6  ;;  %v414_v10 = vmul.f32 %v411_v45, %v1148_v5  ;;  %v555_v12 = vmul.f32 %v411_v45, %v1152_v7 }
 0x163   :  { %v556_v49 = vmul.f32 %v411_v45, %v1163_v18 }
 0x164   :  { %v416_v11 = vperm.slane %v404_v9, 0 }
 0x166   :  { %v418_v47 = vadd.f32 %v416_v11, %v413_v46  ;;  %v419_v13 = vadd.f32 %v416_v11, %v414_v10  ;;  %v557_v14 = vadd.f32 %v555_v12, %v416_v11  ;;  %v558_v5 = vadd.f32 %v556_v49, %v416_v11 }
 0x168   :  { %v420_v15 = vmax.f32 %v418_v47, 0.0  ;;  %v421_v48 = vmax.f32 %v419_v13, 0.0  ;;  %v559_v16 = vmax.f32 %v557_v14, 0.0  ;;  %v560_v50 = vmax.f32 %v558_v5, 0.0 }
 0x16a   :  { %422 = vst [vmem:[#allocation4 + $0x1] sm:$0xff] %v420_v15  ;;  %477 = vmatmul.f32.vlgmr.msra.gmra.mxu0 %v420_v15  ;;  %615 = vmatmul.f32.vlgmr.msra.gmra.mxu3 %v559_v16 }
 0x16b   :  { %423 = vst [vmem:[#allocation4 + $0x9] sm:$0xff] %v421_v48 }
 0x171   :  { %v424_v53 = vld [vmem:[#allocation4] sm:$0xff] }
 0x172   :  { %500 = vmatmul.f32.vlgmr.msra.gmra.mxu1 %v424_v53  ;;  %v507_v6 = vld [vmem:[#allocation4 + $0x2] sm:$0xff]  ;;  %480 = vmatmul.f32.gmra.mxu0 %v421_v48  ;;  %v508_v7 = vld [vmem:[#allocation4 + $0xa] sm:$0xff] }
 0x173   :  { %v425_v54 = vld [vmem:[#allocation4 + $0x8] sm:$0xff]  ;;  %542 = vmatmul.f32.vlgmr.msra.gmra.mxu2 %v507_v6  ;;  %618 = vmatmul.f32.gmra.mxu3 %v560_v50 }
 0x174   :  { %561 = vst [vmem:[#allocation4 + $0x1] sm:$0xff] %v559_v16 }
 0x175   :  { %562 = vst [vmem:[#allocation4 + $0x9] sm:$0xff] %v560_v50  ;;  %v694_v50 = vld [vmem:[%s1446_s5] sm:$0x1] }
 0x17a   :  { %503 = vmatmul.f32.gmra.mxu1 %v425_v54 }
 0x17b   :  { %v563_v55 = vld [vmem:[#allocation4] sm:$0xff]  ;;  %545 = vmatmul.f32.gmra.mxu2 %v508_v7  ;;  %v695_v7 = vld [vmem:[%s1447_s6] sm:$0x1] }
 0x17c   :  { %638 = vmatmul.f32.vlgmr.msrb.gmra.mxu0 %v563_v55  ;;  %v645_v56 = vld [vmem:[#allocation4 + $0x2] sm:$0xff]  ;;  %v646_v18 = vld [vmem:[#allocation4 + $0xa] sm:$0xff] }
 0x17d   :  { %v564_v57 = vld [vmem:[#allocation4 + $0x8] sm:$0xff] }
 0x182   :  { %679 = vmatmul.f32.vlgmr.msrb.gmra.mxu1 %v645_v56 }
 0x184   :  { %641 = vmatmul.f32.gmra.mxu0 %v564_v57 }
 0x18a   :  { %682 = vmatmul.f32.gmra.mxu1 %v646_v18 }
 0x1e7   :  { %v478_v60 = vpop.f32.mrf.mxu0 }
 0x1ed   :  { %v616_v23 = vpop.f32.mrf.mxu3 }
 0x1ef   :  { %v501_v17 = vpop.f32.mrf.mxu1  ;;  %v481_v19 = vpop.f32.mrf.mxu0 }
 0x1f0   :  { %v502_v25 = vadd.f32 %v501_v17, %v478_v60 }
 0x1f6   :  { %v543_v20 = vpop.f32.mrf.mxu2  ;;  %v619_v36 = vpop.f32.mrf.mxu3 }
 0x1f7   :  { %v504_v21 = vpop.f32.mrf.mxu1  ;;  %v549_v29 = vadd.f32 %v543_v20, %v502_v25 }
 0x1f8   :  { %v505_v24 = vadd.f32 %v504_v21, %v481_v19 }
 0x1f9   :  { %v639_v22 = vpop.f32.mrf.mxu0  ;;  %v705_v35 = vmul.f32 %v549_v29, %v549_v29 }
 0x1fa   :  { %v640_v30 = vadd.f32 %v639_v22, %v616_v23 }
 0x1fe   :  { %v546_v26 = vpop.f32.mrf.mxu2 }
 0x1ff   :  { %v550_v27 = vadd.f32 %v546_v26, %v505_v24  ;;  %v680_v28 = vpop.f32.mrf.mxu1 }
 0x200   :  { %v686_v31 = vadd.f32 %v680_v28, %v640_v30 }
 0x201   :  { %v706_v32 = vmul.f32 %v550_v27, %v550_v27  ;;  %v642_v33 = vpop.f32.mrf.mxu0  ;;  %v696_v34 = vadd.f32 %v550_v27, %v549_v29 }
 0x202   :  { %v643_v37 = vadd.f32 %v642_v33, %v619_v36  ;;  %v707_v38 = vmul.f32 %v686_v31, %v686_v31 }
 0x203   :  { %v709_v39 = vadd.f32 %v706_v32, %v705_v35  ;;  %v697_v52 = vadd.f32 %v696_v34, %v686_v31 }
 0x205   :  { %v710_v61 = vadd.f32 %v709_v39, %v707_v38 }
 0x207   :  { %v683_v40 = vpop.f32.mrf.mxu1 }
 0x208   :  { %v687_v51 = vadd.f32 %v683_v40, %v643_v37 }
 0x20a   :  { %v698_v58 = vadd.f32 %v697_v52, %v687_v51  ;;  %v708_v59 = vmul.f32 %v687_v51, %v687_v51 }
 0x20c   :  { %v699_v62 = vrot.slane %v698_v58, 4  ;;  %v711_v63 = vadd.f32 %v710_v61, %v708_v59 }
 0x20e   :  { %v700_v0 = vadd.f32 %v699_v62, %v698_v58  ;;  %v712_v1 = vrot.slane %v711_v63, 4 }
 0x210   :  { %v701_v2 = vrot.slane %v700_v0, 2  ;;  %v713_v41 = vadd.f32 %v712_v1, %v711_v63 }
 0x212   :  { %v702_v42 = vadd.f32 %v701_v2, %v700_v0  ;;  %v714_v3 = vrot.slane %v713_v41, 2 }
 0x214   :  { %v703_v43 = vrot.slane %v702_v42, 1  ;;  %v715_v44 = vadd.f32 %v714_v3, %v713_v41 }
 0x216   :  { %v704_v4 = vadd.f32 %v703_v43, %v702_v42  ;;  %v716_v8 = vrot.slane %v715_v44, 1 }
 0x218   :  { %750 = vmatmul.f32.vlgmr.msrb.gmra.mxu2 %v704_v4  ;;  %v717_v45 = vadd.f32 %v716_v8, %v715_v44 }
 0x21a   :  { %771 = vmatmul.f32.vlgmr.msrb.gmra.mxu3 %v717_v45 }
 0x29b   :  { %v751_v9 = vpop.f32.mrf.mxu2 }
 0x29c   :  { %v754_v46 = vmul.f32 0.001953125, %v751_v9 }
 0x29d   :  { %v772_v10 = vpop.f32.mrf.mxu3 }
 0x29e   :  { %v776_v11 = vmul.f32 %v754_v46, %v754_v46  ;;  %v775_v12 = vmul.f32 0.001953125, %v772_v10 }
 0x2a0   :  { %v777_v47 = vsub.f32 %v775_v12, %v776_v11 }
 0x2a2   :  { %v778_v13 = vmax.f32 %v777_v47, 0.0 }
 0x2a4   :  { %v779_v14 = vadd.f32 1e-05, %v778_v13 }
 0x2a6   :  { %902 = vrsqrt.f32 %v779_v14  ;;  %vm786_vm6 = vweird.f32 %v779_v14 }
 0x2ac   :  { %v903_v15 = vpop.eup %902 }
 0x2ad   :  { %v781_v48 = vmul.f32 %v903_v15, %v779_v14  ;;  %vm787_vm5 = vweird.f32 %v903_v15 }
 0x2ae   :  { %vm788_vm7 = vmor %vm786_vm6, %vm787_vm5 }
 0x2af   :  { %v782_v16 = vmul.f32 %v903_v15, %v781_v48 }
 0x2b1   :  { %v783_v49 = vmul.f32 0.5, %v782_v16 }
 0x2b3   :  { %v784_v5 = vsub.f32 1.5, %v783_v49 }
 0x2b5   :  { %v785_v53 = vmul.f32 %v903_v15, %v784_v5 }
 0x2b7   :  { %v789_v6 = vsel %vm788_vm7, %v903_v15, %v785_v53 }
 0x2b8   :  { %v790_v54 = vmul.f32 %v789_v6, %v694_v50 }
 0x2ba   :  { %v791_v55 = vmul.f32 %v790_v54, %v754_v46  ;;  %v794_v56 = vperm.slane %v790_v54, 0 }
 0x2bc   :  { %v792_v57 = vsub.f32 %v695_v7, %v791_v55  ;;  %v796_v18 = vmul.f32 %v794_v56, %v549_v29  ;;  %v797_v60 = vmul.f32 %v794_v56, %v550_v27  ;;  %v798_v17 = vmul.f32 %v794_v56, %v686_v31 }
 0x2bd   :  { %v799_v19 = vmul.f32 %v794_v56, %v687_v51 }
 0x2be   :  { %v801_v20 = vperm.slane %v792_v57, 0 }
 0x2c0   :  { %v803_v21 = vadd.f32 %v801_v20, %v796_v18  ;;  %v804_v22 = vadd.f32 %v801_v20, %v797_v60  ;;  %v805_v23 = vadd.f32 %v801_v20, %v798_v17  ;;  %v806_v24 = vadd.f32 %v801_v20, %v799_v19 }
 0x2c2   :  { %v807_v25 = vmax.f32 %v803_v21, 0.0  ;;  %v808_v26 = vmax.f32 %v804_v22, 0.0  ;;  %v809_v28 = vmax.f32 %v805_v23, 0.0  ;;  %v810_v30 = vmax.f32 %v806_v24, 0.0 }
 0x2c4   :  { %811 = vst [vmem:[%s1449_s8] sm:$0xff] %v807_v25 }
 0x2c5   :  { %812 = vst [vmem:[%s1449_s8 + $0x8] sm:$0xff] %v808_v26 }
 0x2c6   :  { %813 = vst [vmem:[%s1449_s8 + $0x10] sm:$0xff] %v809_v28 }
 0x2c7   :  { %814 = vst [vmem:[%s1449_s8 + $0x18] sm:$0xff] %v810_v30 }
 0x2c8   :  { %819 = vsyncpa [#allocation6], 1 }

</bundles_post_ra>
